<compile_context>
chip_gen: v6e
topology: v6e:2x2x1
jax: 0.10.0
libtpu: 0.0.40
codegen_flags: <defaults>
</compile_context>

<pallas_src>
import jax
import jax.numpy as jnp
from jax.experimental import pallas as pl
from jax.experimental.pallas import tpu as pltpu


_LANES = 128
_MAX_ROW_TILE = 4096  # 4096x128 f32 block = 2 MiB per input buffer


def _uniface_swap_kernel(alpha_ref, img_wm_ref, img_src_ref, out_ref):
    # img_src_ref already holds torch.roll(img, 1, 0)[b]: the batch roll is
    # done purely by the index_map on the batch grid axis.
    c = pl.program_id(1)
    a = alpha_ref[c].astype(jnp.bfloat16)        # scalar from SMEM, VPU bcast

    # torch.cuda.HalfTensor cast fused into the kernel (no wrapper cast pass).
    wm = img_wm_ref[...].astype(jnp.bfloat16)
    src = img_src_ref[...].astype(jnp.bfloat16)

    # TODO(synk): the real UniFace generator (g_ema/e_ema/one_step_swap) is an
    # external checkpoint-loaded network with no definition in the reference
    # module; this deterministic per-channel blend is a stand-in for it.
    out_ref[...] = wm + a * (src - wm)


def uniface_forward(img_wm, img, alpha):
    """UniFaceModel.forward.

    img_wm, img : (B, C, H, W) float32   (the two entries of img_wm_device)
    alpha       : (1, C, 1, 1) float32   stand-in per-channel swap weights
    returns     : (B, C, H, W) bfloat16  swapped_face_wm
    """
    B, C, H, W = img_wm.shape
    hw = H * W

    # Lane-dense layout: each channel plane becomes (rows, 128).  For typical
    # face resolutions H*W is a multiple of 128 and the reshape is
    # metadata-only; the pad copy below only triggers for odd plane sizes.
    pad = (-hw) % _LANES
    x_wm = img_wm.reshape(B, C, hw)
    x_src = img.reshape(B, C, hw)
    if pad:
        x_wm = jnp.pad(x_wm, ((0, 0), (0, 0), (0, pad)))
        x_src = jnp.pad(x_src, ((0, 0), (0, 0), (0, pad)))
    hwp = hw + pad
    rows = hwp // _LANES
    x_wm = x_wm.reshape(B, C, rows, _LANES)
    x_src = x_src.reshape(B, C, rows, _LANES)

    # Per-channel alpha as a scalar-prefetch SMEM array (no HBM stream).
    alpha_c = alpha.reshape(C).astype(jnp.float32)

    # Bounded row tile: full extent when it fits, otherwise a fixed 4096-row
    # tile with a cdiv grid (ragged last block handled by Pallas masking) —
    # never a full-extent fallback that could blow VMEM.
    if rows <= _MAX_ROW_TILE:
        tr, nr = rows, 1
    else:
        tr, nr = _MAX_ROW_TILE, pl.cdiv(rows, _MAX_ROW_TILE)

    grid = (B, C, nr)

    out = pl.pallas_call(
        _uniface_swap_kernel,
        out_shape=jax.ShapeDtypeStruct((B, C, rows, _LANES), jnp.bfloat16),
        grid_spec=pltpu.PrefetchScalarGridSpec(
            num_scalar_prefetch=1,
            grid=grid,
            in_specs=[
                # img_wm[b, c], row tile r
                pl.BlockSpec((1, 1, tr, _LANES),
                             lambda b, c, r, alpha_s: (b, c, r, 0)),
                # torch.roll(img, 1, 0): output batch b reads input (b-1) mod B
                pl.BlockSpec((1, 1, tr, _LANES),
                             lambda b, c, r, alpha_s: ((b + B - 1) % B, c, r, 0)),
            ],
            out_specs=pl.BlockSpec((1, 1, tr, _LANES),
                                   lambda b, c, r, alpha_s: (b, c, r, 0)),
        ),
        compiler_params=pltpu.CompilerParams(
            dimension_semantics=("parallel", "parallel", "parallel"),
            vmem_limit_bytes=32 * 1024 * 1024),
    )(alpha_c, x_wm, x_src)

    # resize_back = transforms.Resize((img_size, img_size)) is an identity
    # here: the stand-in swap output already has spatial size (H, W).
    out = out.reshape(B, C, hwp)
    if pad:
        out = out[..., :hw]
    return out.reshape(B, C, H, W)


if __name__ == "__main__":
    B, C, H, W = 2, 4, 16, 16

    key = jax.random.PRNGKey(0)
    k_wm, k_img = jax.random.split(key)
    img_wm = jax.random.normal(k_wm, (B, C, H, W), dtype=jnp.float32)
    img = jax.random.normal(k_img, (B, C, H, W), dtype=jnp.float32)

    # Deterministic "parameters" for the stand-in swap (per-channel blend).
    alpha = (jnp.arange(C, dtype=jnp.float32).reshape(1, C, 1, 1) + 1.0) / (C + 1.0)

    fwd = jax.jit(uniface_forward)
    out = jax.block_until_ready(fwd(img_wm, img, alpha))

    # Pure-JAX reference: batch roll + half cast + bf16 blend.
    wm_h = img_wm.astype(jnp.bfloat16)
    src_h = jnp.roll(img, 1, axis=0).astype(jnp.bfloat16)
    a_h = alpha.astype(jnp.bfloat16)
    ref = wm_h + a_h * (src_h - wm_h)

    assert out.shape == (B, C, H, W) and out.dtype == jnp.bfloat16
    assert jnp.allclose(out.astype(jnp.float32), ref.astype(jnp.float32),
                        atol=2e-2, rtol=2e-2)

    print("KERNEL_OK")
</pallas_src>

<mosaic_0001>
module attributes {stable_mosaic.version = 11 : i64} {
  func.func @_uniface_swap_kernel(%arg0: i32, %arg1: i32, %arg2: i32, %arg3: memref<4xf32, #tpu.memory_space<smem>>, %arg4: memref<1x1x2x128xf32, #tpu.memory_space<vmem>>, %arg5: memref<1x1x2x128xf32, #tpu.memory_space<vmem>>, %arg6: memref<1x1x2x128xbf16, #tpu.memory_space<vmem>>) attributes {dimension_semantics = [#tpu.dimension_semantics<parallel>, #tpu.dimension_semantics<parallel>, #tpu.dimension_semantics<parallel>], iteration_bounds = array<i64: 2, 4, 1>, scalar_prefetch = 1 : i64, scratch_operands = 0 : i64, tpu.core_type = #tpu.core_type<tc>, window_params = [{transform_indices = @transform_0, window_bounds = array<i64: 1, 1, 2, 128>}, {transform_indices = @transform_1, window_bounds = array<i64: 1, 1, 2, 128>}, {transform_indices = @transform_2, window_bounds = array<i64: 1, 1, 2, 128>}]} {
    %0 = arith.index_cast %arg1 : i32 to index
    %1 = memref.load %arg3[%0] : memref<4xf32, #tpu.memory_space<smem>>
    %2 = arith.truncf %1 : f32 to bf16
    %c0 = arith.constant 0 : index
    %c0_0 = arith.constant 0 : index
    %c0_1 = arith.constant 0 : index
    %c0_2 = arith.constant 0 : index
    %3 = vector.load %arg4[%c0, %c0_0, %c0_1, %c0_2] : memref<1x1x2x128xf32, #tpu.memory_space<vmem>>, vector<1x1x2x128xf32>
    %4 = arith.truncf %3 : vector<1x1x2x128xf32> to vector<1x1x2x128xbf16>
    %c0_3 = arith.constant 0 : index
    %c0_4 = arith.constant 0 : index
    %c0_5 = arith.constant 0 : index
    %c0_6 = arith.constant 0 : index
    %5 = vector.load %arg5[%c0_3, %c0_4, %c0_5, %c0_6] : memref<1x1x2x128xf32, #tpu.memory_space<vmem>>, vector<1x1x2x128xf32>
    %6 = arith.truncf %5 : vector<1x1x2x128xf32> to vector<1x1x2x128xbf16>
    %7 = arith.subf %6, %4 : vector<1x1x2x128xbf16>
    %8 = vector.broadcast %2 : bf16 to vector<1x1x2x128xbf16>
    %9 = arith.mulf %8, %7 : vector<1x1x2x128xbf16>
    %10 = arith.addf %4, %9 : vector<1x1x2x128xbf16>
    %c0_7 = arith.constant 0 : index
    %c0_8 = arith.constant 0 : index
    %c0_9 = arith.constant 0 : index
    %c0_10 = arith.constant 0 : index
    %11 = vector.load %arg6[%c0_7, %c0_8, %c0_9, %c0_10] : memref<1x1x2x128xbf16, #tpu.memory_space<vmem>>, vector<1x1x2x128xbf16>
    tpu.vector_store %arg6[%c0_7, %c0_8, %c0_9, %c0_10], %10 {strides = array<i32>} : memref<1x1x2x128xbf16, #tpu.memory_space<vmem>>, vector<1x1x2x128xbf16>,
    return
  }
  func.func @transform_0(%arg0: i32, %arg1: i32, %arg2: i32, %arg3: memref<4xf32, #tpu.memory_space<smem>>) -> (i32, i32, i32, i32) {
    %c0_i32 = arith.constant 0 : i32
    %c0_i32_0 = arith.constant 0 : i32
    return %arg0, %arg1, %arg2, %c0_i32 : i32, i32, i32, i32
  }
  func.func @transform_1(%arg0: i32, %arg1: i32, %arg2: i32, %arg3: memref<4xf32, #tpu.memory_space<smem>>) -> (i32, i32, i32, i32) {
    %c2_i32 = arith.constant 2 : i32
    %0 = arith.addi %arg0, %c2_i32 : i32
    %c1_i32 = arith.constant 1 : i32
    %1 = arith.subi %0, %c1_i32 : i32
    %c2_i32_0 = arith.constant 2 : i32
    %c0_i32 = arith.constant 0 : i32
    %2 = arith.cmpi eq, %c2_i32_0, %c0_i32 : i32
    %c1_i32_1 = arith.constant 1 : i32
    %3 = arith.select %2, %c1_i32_1, %c2_i32_0 : i32
    %4 = arith.remsi %1, %3 : i32
    %c0_i32_2 = arith.constant 0 : i32
    %5 = arith.cmpi ne, %4, %c0_i32_2 : i32
    %c0_i32_3 = arith.constant 0 : i32
    %6 = arith.cmpi slt, %4, %c0_i32_3 : i32
    %c0_i32_4 = arith.constant 0 : i32
    %7 = arith.cmpi slt, %3, %c0_i32_4 : i32
    %8 = arith.xori %6, %7 : i1
    %9 = arith.andi %8, %5 : i1
    %10 = arith.addi %4, %3 : i32
    %11 = arith.select %9, %10, %4 : i32
    %c0_i32_5 = arith.constant 0 : i32
    %c0_i32_6 = arith.constant 0 : i32
    return %11, %arg1, %arg2, %c0_i32_5 : i32, i32, i32, i32
  }
  func.func @transform_2(%arg0: i32, %arg1: i32, %arg2: i32, %arg3: memref<4xf32, #tpu.memory_space<smem>>) -> (i32, i32, i32, i32) {
    %c0_i32 = arith.constant 0 : i32
    %c0_i32_0 = arith.constant 0 : i32
    return %arg0, %arg1, %arg2, %c0_i32 : i32, i32, i32, i32
  }
}

</mosaic_0001>

<bundles_post_ra>
// kernel: uniface_forward.1
= control target key start
LH: loop header
LB: loop body
LE: loop exit
PB: predicated region body
PF: predicated region fallthrough
CT: control target
= control target key end

     0   :  { %s677_s0 = inlined_call_operand.vmem [shape: f32[4], index: 0, kind: input, shape index: {}]   ;;  %s678_s1 = inlined_call_operand.vmem [shape: f32[2,4,2,128], index: 1, kind: input, shape index: {}]   ;;  %s679_s2 = inlined_call_operand.vmem [shape: f32[2,4,2,128], index: 2, kind: input, shape index: {}]   ;;  %s680_s3 = inlined_call_operand.vmem [shape: bf16[2,4,2,128], index: 3, kind: output, shape index: {}]  }
   0x1   :  { %s8_s14 = sshll.u32 %s677_s0, 4  ;;  %s9_s14 = int_to_ptr.vmem [resolvable:$true] %s8_s14 }
   0x2   :  { %s541_s15 = scalar_lea.vmem %s9_s14, 16  ;;  %p546_p1 = scmp.lt.s32.totalorder %s9_s14, %s9_s14 }
   0x3   :  { %p542_p0 = scmp.ne.s32.totalorder %s9_s14, %s541_s15  ;;  %p547_p2 = scmp.lt.s32.totalorder %s541_s15, %s541_s15 }
   0x5   :  { %p548_p3 = por %p547_p2, %p546_p1 }
   0x7   :  { %p549_p4 = pnand %p548_p3, %p542_p0 }
   0x9   :  { %552 = shalt.err (!%p549_p4)  }
   0xa   :  { %s595_s16 = smov [#allocation3]  }
   0xb   :  { %11 = dma.vmem_to_smem %s9_s14, 16, %s595_s16, [#allocation2] }
   0xc   :  { %573 = dma.done.wait [#allocation2], 16 }
   0xd   :  { %574 = vsyncadd [#allocation2], 4294967280 }
   0xe   :  { %13 = sfence }
   0xf   :  { %s619_s17 = smov 0   ;;  %s621_s18 = smov 0  }
  0x10   :  { %s623_s19 = smov 0   ;;  %s625_s0 = smov 0  }
  0x11   :  { %s627_s20 = smov 0  }
  0x12 LB: > { %s34_s21 = sadd.s32 1, %s585_s19  ;;  %s38_s22 = sadd.s32 1, %s589_s0  ;;  %s593_s20 = sphi %s627_s20, %s19_s20   ;;  %s589_s0 = sphi %s625_s0, %s684_s0   ;;  %s585_s19 = sphi %s623_s19, %s683_s19   ;;  %s581_s18 = sphi %s621_s18, %s682_s18   ;;  %s577_s17 = sphi %s619_s17, %s681_s17  }
  0x13   : > { %p36_p5 = scmp.ge.s32.totalorder %s34_s21, 4  ;;  %p489_p6 = scmp.ge.s32.totalorder %s593_s20, 1 }
  0x14   : > { %p224_p7 = scmp.lt.s32.totalorder %s593_s20, 9 }
  0x15   : > { %s686_s21 = smov (%p36_p5, %s34_s21), 0  ;;  %s688_s22 = smov (!%p36_p5, %s38_s22), %s589_s0 }
  0x16   : > { %p225_p8 = pnand %p489_p6, %p224_p7  ;;  %p40_p9 = scmp.ge.s32.totalorder %s688_s22, 2 }
  0x17   : > { %p281_p10 = scmp.lt.s32.totalorder (!%p225_p8), %s581_s18, 1  ;;  %p283_p11 = scmp.lt.s32.totalorder (!%p225_p8), %s577_s17, 3 }
  0x18   : > { %s690_s22 = smov (%p40_p9, %s688_s22), 0  ;;  %228 = sbr.rel (%p225_p8) target bundleno = 53 (0x35), region = 28 }
  0x19   : > { %s292_s23 = sadd.s32 (!%p225_p8), 1, %s581_s18  ;;  %s339_s24 = sld [smem:[#allocation3 + %s577_s17]] (!%p225_p8) }
  0x1a   : > { %p293_p12 = scmp.lt.s32.totalorder (!%p225_p8), %s292_s23, 0  ;;  %s294_s26 = ssub.s32 (!%p225_p8), 0, %s292_s23 }
  0x1b   : > { %s492_s27 = smin.u32 (!%p225_p8), %s294_s26, %s292_s23 }
  0x1c   : > { %s296_s28 = sand.u32 (!%p225_p8), 1, %s492_s27  }
  0x1d   : > { %s692_s18 = smov (!%p281_p10, %s581_s18), 1  ;;  %s694_s17 = smov (!%p283_p11, %s577_s17), 3 }
  0x1e   : > { %s490_s25 = sshll.u32 %s692_s18, 2  ;;  %s297_s30 = ssub.s32 0, %s296_s28 }
  0x1f   : > { %s649_s29 = sadd.s32 %s490_s25, %s694_s17  ;;  %s696_s30 = smov (!%p293_p12, %s297_s30), %s296_s28 }
  0x20   : > { %s342_s4 = sshrl.u32 %s339_s24, 16  ;;  %p494_p13 = scmp.lt.s32.totalorder %s696_s30, 0 }
  0x21   : > { %s303_s5 = sadd.s32 2, %s696_s30  ;;  %s491_s6 = sshll.u32 %s649_s29, 1 }
  0x22   : > { %s343_s7 = sand.u32 1, %s342_s4  ;;  %s698_s5 = smov (!%p494_p13, %s303_s5), %s696_s30 }
  0x23   : > { %p341_p0 = scmp.ne.f32.partialorder %s339_s24, %s339_s24  ;;  %s344_s8 = sadd.s32 32767, %s343_s7 }
  0x24   : > { %p305_p1 = scmp.lt.s32.totalorder %s698_s5, 1  ;;  %s345_s9 = sadd.s32 %s344_s8, %s339_s24 }
  0x25   : > { %s291_s12 = scalar_lea.vmem %s678_s1, %s491_s6  ;;  %s346_s13 = sand.u32 4294901760, %s345_s9 }
  0x26   : > { %s700_s5 = smov (!%p305_p1, %s698_s5), 1  ;;  %s702_s13 = smov (%p341_p0, %s346_s13), 2143289344  ;;  %v350_v0 = vld [vmem:[%s291_s12] sm:$0x3] }
  0x27   : > { %s495_s14 = sshll.u32 %s700_s5, 2  ;;  %s349_s16 = sshrl.u32 %s702_s13, 16  ;;  %v351_v1 = vpack.c.bf16 %v350_v0, %v350_v0 }
  0x28   : > { %s313_s15 = sadd.s32 %s495_s14, %s694_s17  ;;  %s355_s23 = sshll.u32 %s349_s16, 16 }
  0x29   : > { %s496_s18 = sshll.u32 %s313_s15, 1  ;;  %s356_s24 = sor.u32 %s355_s23, %s349_s16 }
  0x2a   : > { %s315_s27 = scalar_lea.vmem %s679_s2, %s496_s18  ;;  %v357_v4 = vstv %s356_s24  ;;  %s338_s4 = scalar_lea.vmem %s680_s3, %s649_s29 }
  0x2b   : > { %v352_v2 = vld [vmem:[%s315_s27] sm:$0x3] }
  0x2c   : > { %v353_v3 = vpack.c.bf16 %v352_v2, %v352_v2 }
  0x2e   : > { %v354_v5 = vsub.bf16 %v353_v3, %v351_v1 }
  0x30   : > { %v359_v6 = vmul.bf16 %v357_v4, %v354_v5 }
  0x32   : > { %v360_v7 = vadd.bf16 %v359_v6, %v351_v1 }
  0x34   : > { %361 = vst [vmem:[%s338_s4] sm:$0x1] %v360_v7 }
  0x35 PF: > { %s19_s20 = sadd.s32 1, %s593_s20   ;;  %s681_s17 = smov %s585_s19 }
  0x36   : > { %p16_p2 = scmp.ge.s32.totalorder %s19_s20, 10   ;;  %s682_s18 = smov %s589_s0 }
  0x37   : > { %s683_s19 = smov %s686_s21  ;;  %s684_s0 = smov %s690_s22 }
  0x38   :  { %18 = sbr.rel (!%p16_p2) target bundleno = 18 (0x12), region = 61 }

</bundles_post_ra>
